<compile_context>
chip_gen: v5e
topology: v5e:2x2
jax: 0.10.0
libtpu: 0.0.40
codegen_flags: <defaults>
</compile_context>

<pallas_src>
import jax
import jax.numpy as jnp
from jax.experimental import pallas as pl
from jax.experimental.pallas import tpu as pltpu


def _mish_kernel(x_ref, o_ref):
    """mish(x) = x * tanh(softplus(x)), softplus threshold=20 (PyTorch).

    Algebraic rewrite: with t = (1 + exp(x))^2,
        tanh(log1p(exp(x))) = (t - 1) / (t + 1)
    so only one exp (EUP) + one approximate reciprocal (EUP) are needed instead
    of exp + log1p + tanh. For x > 20, PyTorch softplus returns x and
    tanh(x) == 1.0 in f32, so mish(x) == x (also avoids (1+e^x)^2 overflow).
    """
    xf = x_ref[...].astype(jnp.float32)
    e = jnp.exp(jnp.minimum(xf, 20.0))        # clamp keeps t finite even past threshold
    t = (1.0 + e) * (1.0 + e)                 # t in [1, ~2.4e17] -> no overflow
    d = t + 1.0
    # Cheap EUP reciprocal; two Newton-Raphson refinements (pure VALU, free in a
    # mem-bound kernel) restore full f32 accuracy so the 1e-5 tolerance holds.
    inv = pl.reciprocal(d, approx=True)
    inv = inv * (2.0 - d * inv)
    inv = inv * (2.0 - d * inv)
    y = xf * (t - 1.0) * inv
    y = jnp.where(xf > 20.0, xf, y)           # softplus threshold branch
    o_ref[...] = y.astype(o_ref.dtype)


_BLOCK_ELEMS = 512 * 1024  # ~2 MiB per f32 VMEM buffer (~8 MiB double-buffered in+out)


def mish(x, *, block_elems=_BLOCK_ELEMS, donate_input=False):
    """Elementwise Mish on an arbitrary-shaped array via a Pallas TPU kernel."""
    orig_shape = x.shape
    n = x.size
    if n == 0:
        return x

    # Lane-dense 2D slab. Prefer 1024 lanes (fewer, larger, unmasked DMAs) when
    # it divides evenly; otherwise 128 lanes, padding only to the next multiple
    # of 128 (skipped entirely when n % 128 == 0).
    lanes = 1024 if n % 1024 == 0 else 128
    n_pad = pl.cdiv(n, lanes) * lanes

    x_flat = jnp.ravel(x)
    if n_pad != n:
        x_flat = jnp.pad(x_flat, (0, n_pad - n))
    rows = n_pad // lanes
    x2d = x_flat.reshape(rows, lanes)

    # ~2 MiB blocks. block_rows is a multiple of 8 so a ragged trailing block is
    # legal (Pallas masks it); tiny inputs collapse to one full-extent block.
    block_rows = max((block_elems // lanes) // 8 * 8, 8)
    block_rows = min(block_rows, rows)
    grid = (pl.cdiv(rows, block_rows),)

    out2d = pl.pallas_call(
        _mish_kernel,
        out_shape=jax.ShapeDtypeStruct((rows, lanes), x.dtype),
        grid_spec=pltpu.PrefetchScalarGridSpec(
            num_scalar_prefetch=0,
            grid=grid,
            in_specs=[pl.BlockSpec((block_rows, lanes), lambda i: (i, 0))],
            out_specs=pl.BlockSpec((block_rows, lanes), lambda i: (i, 0)),
        ),
        compiler_params=pltpu.CompilerParams(
            # Multi-block grids shard across both v7x TensorCores; a small input
            # naturally becomes a single full-extent block.
            dimension_semantics=("parallel",),
        ),
        input_output_aliases=({0: 0} if donate_input else {}),
    )(x2d)

    out_flat = out2d.reshape(-1)
    if n_pad != n:
        out_flat = out_flat[:n]
    return out_flat.reshape(orig_shape)


def _mish_ref(x):
    """Pure-JAX reference matching torch: x * tanh(softplus(x)), threshold=20."""
    xf = x.astype(jnp.float32)
    sp = jnp.where(xf > 20.0, xf, jnp.log1p(jnp.exp(jnp.minimum(xf, 20.0))))
    return (xf * jnp.tanh(sp)).astype(x.dtype)


if __name__ == "__main__":
    key = jax.random.PRNGKey(0)
    k1, k2 = jax.random.split(key)

    # NCHW activation tensor, as DenseBlock_light's conv stack would produce.
    x = jax.random.normal(k1, (2, 4, 16, 16), dtype=jnp.float32) * 3.0
    y = mish(x)
    jax.block_until_ready(y)
    y_ref = _mish_ref(x)
    assert y.shape == x.shape and y.dtype == x.dtype
    assert jnp.allclose(y, y_ref, atol=1e-5, rtol=1e-5)

    # Ragged path: size divisible by 128 but not 1024, small blocks so the grid
    # has a partial trailing block; large scale also exercises the x>20 branch.
    x2 = jax.random.normal(k2, (1, 3, 16, 40), dtype=jnp.float32) * 25.0
    y2 = mish(x2, block_elems=8 * 128)
    jax.block_until_ready(y2)
    assert jnp.allclose(y2, _mish_ref(x2), atol=1e-5, rtol=1e-5)

    # Optional in-place-style variant (input_output_aliases={0: 0}).
    y3 = mish(x, donate_input=True)
    jax.block_until_ready(y3)
    assert jnp.allclose(y3, y_ref, atol=1e-5, rtol=1e-5)

    print("KERNEL_OK")
</pallas_src>

<mosaic_0001>
module attributes {stable_mosaic.version = 11 : i64} {
  func.func @_mish_kernel(%arg0: i32, %arg1: memref<2x1024xf32, #tpu.memory_space<vmem>>, %arg2: memref<2x1024xf32, #tpu.memory_space<vmem>>) attributes {dimension_semantics = [#tpu.dimension_semantics<parallel>], iteration_bounds = array<i64: 1>, scalar_prefetch = 0 : i64, scratch_operands = 0 : i64, tpu.core_type = #tpu.core_type<tc>, window_params = [{transform_indices = @transform_0, window_bounds = array<i64: 2, 1024>}, {transform_indices = @transform_1, window_bounds = array<i64: 2, 1024>}]} {
    %c0 = arith.constant 0 : index
    %c0_0 = arith.constant 0 : index
    %0 = vector.load %arg1[%c0, %c0_0] : memref<2x1024xf32, #tpu.memory_space<vmem>>, vector<2x1024xf32>
    %cst = arith.constant 2.000000e+01 : f32
    %1 = vector.broadcast %cst : f32 to vector<2x1024xf32>
    %2 = arith.minimumf %0, %1 : vector<2x1024xf32>
    %3 = math.exp %2 : vector<2x1024xf32>
    %cst_1 = arith.constant 1.000000e+00 : f32
    %4 = vector.broadcast %cst_1 : f32 to vector<2x1024xf32>
    %5 = arith.addf %4, %3 : vector<2x1024xf32>
    %cst_2 = arith.constant 1.000000e+00 : f32
    %6 = vector.broadcast %cst_2 : f32 to vector<2x1024xf32>
    %7 = arith.addf %6, %3 : vector<2x1024xf32>
    %8 = arith.mulf %5, %7 : vector<2x1024xf32>
    %cst_3 = arith.constant 1.000000e+00 : f32
    %9 = vector.broadcast %cst_3 : f32 to vector<2x1024xf32>
    %10 = arith.addf %8, %9 : vector<2x1024xf32>
    %11 = tpu.reciprocal %10 {approx = true} : vector<2x1024xf32> -> vector<2x1024xf32>
    %12 = arith.mulf %10, %11 : vector<2x1024xf32>
    %cst_4 = arith.constant 2.000000e+00 : f32
    %13 = vector.broadcast %cst_4 : f32 to vector<2x1024xf32>
    %14 = arith.subf %13, %12 : vector<2x1024xf32>
    %15 = arith.mulf %11, %14 : vector<2x1024xf32>
    %16 = arith.mulf %10, %15 : vector<2x1024xf32>
    %cst_5 = arith.constant 2.000000e+00 : f32
    %17 = vector.broadcast %cst_5 : f32 to vector<2x1024xf32>
    %18 = arith.subf %17, %16 : vector<2x1024xf32>
    %19 = arith.mulf %15, %18 : vector<2x1024xf32>
    %cst_6 = arith.constant 1.000000e+00 : f32
    %20 = vector.broadcast %cst_6 : f32 to vector<2x1024xf32>
    %21 = arith.subf %8, %20 : vector<2x1024xf32>
    %22 = arith.mulf %0, %21 : vector<2x1024xf32>
    %23 = arith.mulf %22, %19 : vector<2x1024xf32>
    %cst_7 = arith.constant 2.000000e+01 : f32
    %24 = vector.broadcast %cst_7 : f32 to vector<2x1024xf32>
    %25 = arith.cmpf ogt, %0, %24 : vector<2x1024xf32>
    %26 = arith.select %25, %0, %23 : vector<2x1024xi1>, vector<2x1024xf32>
    %c0_8 = arith.constant 0 : index
    %c0_9 = arith.constant 0 : index
    %27 = vector.load %arg2[%c0_8, %c0_9] : memref<2x1024xf32, #tpu.memory_space<vmem>>, vector<2x1024xf32>
    tpu.vector_store %arg2[%c0_8, %c0_9], %26 {strides = array<i32>} : memref<2x1024xf32, #tpu.memory_space<vmem>>, vector<2x1024xf32>,
    return
  }
  func.func @transform_0(%arg0: i32) -> (i32, i32) {
    %c0_i32 = arith.constant 0 : i32
    %c0_i32_0 = arith.constant 0 : i32
    return %arg0, %c0_i32 : i32, i32
  }
  func.func @transform_1(%arg0: i32) -> (i32, i32) {
    %c0_i32 = arith.constant 0 : i32
    %c0_i32_0 = arith.constant 0 : i32
    return %arg0, %c0_i32 : i32, i32
  }
}

</mosaic_0001>

<bundles_post_ra>
// kernel: tpu_custom_call.1
= control target key start
LH: loop header
LB: loop body
LE: loop exit
PB: predicated region body
PF: predicated region fallthrough
CT: control target
= control target key end

     0   :  { %6 = vsyncpa [#allocation3], 0  ;;  %s162_s0 = inlined_call_operand.hbm [shape: f32[2,1024], index: 0, kind: input, shape index: {}]   ;;  %s163_s1 = inlined_call_operand.hbm [shape: f32[2,1024], index: 1, kind: output, shape index: {}]  }
   0x1   :  { %7 = vsyncpa [#allocation4], 0  ;;  %s13_s8 = sshll.u32 %s162_s0, 4  ;;  %s144_s9 = smov [#allocation2]   ;;  %s14_s8 = int_to_ptr.hbm [resolvable:$true] %s13_s8 }
   0x2   :  { %s15_s10 = sshll.u32 %s144_s9, 4  ;;  %s16_s10 = int_to_ptr.vmem [resolvable:$true] %s15_s10 }
   0x3   :  { %18 = dma.hbm_to_vmem [thread:$0]  %s14_s8, 256, %s16_s10, [#allocation3]  }
   0x4   :  { %140 = dma.done.wait [#allocation3], 256  }
   0x5   :  { %141 = vsyncadd [#allocation3], 4294967040  ;;  %v23_v0 = vld [vmem:[#allocation2] sm:$0xff]  ;;  %v24_v1 = vld [vmem:[#allocation2 + $0x8] sm:$0xff]  ;;  %s145_s0 = smov [#allocation5]   ;;  %s70_s14 = sshll.u32 %s163_s1, 4  ;;  %s71_s14 = int_to_ptr.hbm [resolvable:$true] %s70_s14 }
   0x6   :  { %v25_v2 = vmin.f32 %v23_v0, 20.0  ;;  %v26_v3 = vmin.f32 %v24_v1, 20.0  ;;  %vm57_vm0 = vcmp.gt.f32.partialorder %v23_v0, 20.0  ;;  %s68_s11 = sshll.u32 %s145_s0, 4  ;;  %vm58_vm1 = vcmp.gt.f32.partialorder %v24_v1, 20.0  ;;  %s69_s11 = int_to_ptr.vmem [resolvable:$true] %s68_s11 }
   0x8   :  { %v27_v4 = vmul.f32 1.442695, %v25_v2  ;;  %v29_v5 = vmul.f32 1.442695, %v26_v3 }
   0xa   :  { %84 = vpow2.f32 %v27_v4 }
   0xb   :  { %86 = vpow2.f32 %v29_v5 }
  0x10   :  { %v85_v6 = vpop.eup %84 }
  0x11   :  { %v87_v7 = vpop.eup %86  ;;  %v31_v8 = vadd.f32 1.0, %v85_v6 }
  0x12   :  { %v32_v9 = vadd.f32 1.0, %v87_v7 }
  0x13   :  { %v33_v10 = vmul.f32 %v31_v8, %v31_v8 }
  0x14   :  { %v34_v11 = vmul.f32 %v32_v9, %v32_v9 }
  0x15   :  { %v35_v12 = vadd.f32 1.0, %v33_v10  ;;  %v80_v21 = vadd.f32 -1.0, %v33_v10 }
  0x16   :  { %v36_v13 = vadd.f32 1.0, %v34_v11  ;;  %v81_v23 = vadd.f32 -1.0, %v34_v11 }
  0x17   :  { %88 = vrcp.f32 %v35_v12  ;;  %v53_v27 = vmul.f32 %v80_v21, %v23_v0 }
  0x18   :  { %90 = vrcp.f32 %v36_v13  ;;  %v54_v29 = vmul.f32 %v81_v23, %v24_v1 }
  0x1d   :  { %v89_v14 = vpop.eup %88 }
  0x1e   :  { %v91_v15 = vpop.eup %90  ;;  %v39_v16 = vmul.f32 %v89_v14, %v35_v12 }
  0x1f   :  { %v40_v17 = vmul.f32 %v91_v15, %v36_v13 }
  0x20   :  { %v41_v18 = vsub.f32 2.0, %v39_v16 }
  0x21   :  { %v42_v19 = vsub.f32 2.0, %v40_v17 }
  0x22   :  { %v43_v20 = vmul.f32 %v89_v14, %v41_v18 }
  0x23   :  { %v44_v22 = vmul.f32 %v91_v15, %v42_v19 }
  0x24   :  { %v45_v24 = vmul.f32 %v43_v20, %v35_v12 }
  0x25   :  { %v46_v25 = vmul.f32 %v44_v22, %v36_v13 }
  0x26   :  { %v47_v26 = vsub.f32 2.0, %v45_v24 }
  0x27   :  { %v48_v28 = vsub.f32 2.0, %v46_v25 }
  0x28   :  { %v49_v30 = vmul.f32 %v47_v26, %v43_v20 }
  0x29   :  { %v50_v31 = vmul.f32 %v48_v28, %v44_v22 }
  0x2a   :  { %v55_v32 = vmul.f32 %v53_v27, %v49_v30 }
  0x2b   :  { %v56_v33 = vmul.f32 %v54_v29, %v50_v31 }
  0x2c   :  { %v59_v34 = vsel %vm57_vm0, %v23_v0, %v55_v32 }
  0x2d   :  { %61 = vst [vmem:[#allocation5] sm:$0xff] %v59_v34  ;;  %v60_v35 = vsel %vm58_vm1, %v24_v1, %v56_v33 }
  0x2e   :  { %62 = vst [vmem:[#allocation5 + $0x8] sm:$0xff] %v60_v35 }
  0x2f   :  { %73 = dma.vmem_to_hbm [thread:$0]  %s69_s11, 256, %s71_s14, [#allocation4]  }
  0x30   :  { %142 = dma.done.wait [#allocation4], 256  }
  0x31   :  { %143 = vsyncadd [#allocation4], 4294967040 }
  0x32   :  { %78 = vsyncpa [#allocation3], 1 }
  0x33   :  { %79 = vsyncpa [#allocation4], 1 }

</bundles_post_ra>
